<compile_context>
chip_gen: v7x
topology: tpu7x:2x2x1
jax: 0.10.0
libtpu: 0.0.40
codegen_flags: <defaults>
</compile_context>

<pallas_src>
import functools
import math

import jax
import jax.numpy as jnp
from jax import lax
from jax.experimental import pallas as pl
from jax.experimental.pallas import tpu as pltpu


_CHUNK = 256  # rows per in-kernel matmul + sin + store step


def make_omega(d_model: int) -> jnp.ndarray:
    assert d_model % 2 == 0, "Only support even d_model."
    d_half = d_model // 2
    exponent = jnp.arange(d_half, dtype=jnp.float32) / d_half
    return jnp.exp(-math.log(10000.0) * exponent)  # (d_half,)


# ----------------------------------------------------------------------------- kernels


def _sin_packed_kernel(xt_ref, w_ref, shift_ref, out_ref, *, chunk):
    """Lane-dense path (d_model < 128, 128 % d_model == 0).

    xt_ref:    (K, bn)  f32  x transposed (rows on lanes), K = G padded to >= 8
    w_ref:     (K, 128) f32  expansion * omega matrix, one non-zero per column
    shift_ref: (1, 128) f32  0 for the sin half, pi/2 for the cos half
    out_ref:   (bn, 128)     out[r, g*d+k] = sin(x[r*G+g]*omega_full[k]+shift[k])
    """
    w = w_ref[...]            # resident; loaded once per block
    shift = shift_ref[...]
    bn = out_ref.shape[0]

    def compute(xt_chunk):
        # One MXU matmul = orientation flip + lane expansion + (*omega).
        phase = lax.dot_general(
            xt_chunk, w,
            dimension_numbers=(((0,), (0,)), ((), ())),
            precision=lax.Precision.HIGHEST,
            preferred_element_type=jnp.float32,
        )
        return jnp.sin(phase + shift).astype(out_ref.dtype)

    nfull, rem = divmod(bn, chunk)
    if nfull > 0:
        def body(c, carry):
            r0 = pl.multiple_of(c * chunk, chunk)
            out_ref[pl.ds(r0, chunk), :] = compute(xt_ref[:, pl.ds(r0, chunk)])
            return carry

        lax.fori_loop(0, nfull, body, 0)
    if rem > 0:
        r0 = nfull * chunk
        out_ref[pl.ds(r0, rem), :] = compute(xt_ref[:, pl.ds(r0, rem)])


def _sin_dense_kernel(x_ref, omega_ref, shift_ref, out_ref):
    """Fallback (d_model >= 128, or d_model does not divide 128).

    x_ref: (bn, 1) f32 ; omega_ref / shift_ref: (1, d_model) f32.
    """
    phase = x_ref[...] * omega_ref[...] + shift_ref[...]
    out_ref[...] = jnp.sin(phase).astype(out_ref.dtype)


# ----------------------------------------------------------------------------- block sizing


def _pick_block_rows_packed(rows, out_row_bytes, *, target_bytes=8 << 20,
                            max_rows=16384):
    """~8 MiB output blocks, chunk-aligned, and >= 2 grid steps when possible
    (v7x has 2 TensorCores; a single-block grid leaves one idle)."""
    if rows <= 2 * _CHUNK:
        return rows  # single full-extent block (legal: equals the array dims)
    t = max(_CHUNK, min(max_rows, target_bytes // max(out_row_bytes, 1)))
    t = (t // _CHUNK) * _CHUNK
    half = ((rows + 2 * _CHUNK - 1) // (2 * _CHUNK)) * _CHUNK  # ~ceil(rows/2)
    return max(_CHUNK, min(t, half))


def _pick_block_rows_dense(rows, d_model, *, target_bytes=512 << 10, max_rows=512):
    t = max(8, min(max_rows, target_bytes // (4 * d_model)))
    t = max(8, (t // 8) * 8)
    return rows if rows <= t else t


# ----------------------------------------------------------------------------- launches


def _launch_packed(x_t, w, shift_row, out_dtype, block_rows):
    k_dim, rows = int(x_t.shape[0]), int(x_t.shape[1])
    width = int(w.shape[-1])
    out_bytes = rows * width * jnp.dtype(out_dtype).itemsize
    return pl.pallas_call(
        functools.partial(_sin_packed_kernel, chunk=_CHUNK),
        out_shape=jax.ShapeDtypeStruct((rows, width), out_dtype),
        grid_spec=pltpu.PrefetchScalarGridSpec(
            num_scalar_prefetch=0,
            grid=(pl.cdiv(rows, block_rows),),
            in_specs=[
                pl.BlockSpec((k_dim, block_rows), lambda i: (0, i)),  # x^T (lane-dense reads)
                pl.BlockSpec((k_dim, width), lambda i: (0, 0)),       # resident
                pl.BlockSpec((1, width), lambda i: (0, 0)),           # resident
            ],
            out_specs=pl.BlockSpec((block_rows, width), lambda i: (i, 0)),
        ),
        compiler_params=pltpu.CompilerParams(
            dimension_semantics=("parallel",),     # shard grid over v7x's 2 TCs
            vmem_limit_bytes=32 * 1024 * 1024,     # ~17 MiB double-buffered footprint
        ),
        cost_estimate=pl.CostEstimate(
            flops=2 * rows * k_dim * width + 2 * rows * width,
            transcendentals=rows * width,
            bytes_accessed=4 * (k_dim * rows + k_dim * width + width) + out_bytes,
        ),
    )(x_t, w, shift_row)


def _launch_dense(x2d, omega_row, shift_row, out_dtype, block_rows):
    rows = int(x2d.shape[0])
    width = int(omega_row.shape[-1])
    out_bytes = rows * width * jnp.dtype(out_dtype).itemsize
    return pl.pallas_call(
        _sin_dense_kernel,
        out_shape=jax.ShapeDtypeStruct((rows, width), out_dtype),
        grid_spec=pltpu.PrefetchScalarGridSpec(
            num_scalar_prefetch=0,
            grid=(pl.cdiv(rows, block_rows),),
            in_specs=[
                pl.BlockSpec((block_rows, 1), lambda i: (i, 0)),
                pl.BlockSpec((1, width), lambda i: (0, 0)),           # resident
                pl.BlockSpec((1, width), lambda i: (0, 0)),           # resident
            ],
            out_specs=pl.BlockSpec((block_rows, width), lambda i: (i, 0)),
        ),
        compiler_params=pltpu.CompilerParams(
            dimension_semantics=("parallel",),
            vmem_limit_bytes=32 * 1024 * 1024,
        ),
        cost_estimate=pl.CostEstimate(
            flops=2 * rows * width,
            transcendentals=rows * width,
            bytes_accessed=4 * (rows + 2 * width) + out_bytes,
        ),
    )(x2d, omega_row, shift_row)


# ----------------------------------------------------------------------------- wrapper


@functools.partial(jax.jit, static_argnames=("out_dtype",))
def sinusoidal_embedding(x, omega, *, out_dtype=jnp.float32):
    """Pallas TPU equivalent of SinusodialEmbedding.forward.

    x: any shape (...), omega: (d_half,).  Returns (..., 2 * d_half).
    Use out_dtype=jnp.bfloat16 on HBM-bound v5e/v6e if the consumer allows it
    (phase math stays f32 either way).
    """
    d_half = int(omega.shape[-1])
    d_model = 2 * d_half
    orig_shape = x.shape

    xf = x.reshape(-1).astype(jnp.float32)
    n = int(xf.shape[0])

    omega = omega.astype(jnp.float32)
    omega_full = jnp.concatenate([omega, omega])                         # (d_model,)
    shift_full = jnp.concatenate(
        [jnp.zeros((d_half,), jnp.float32),
         jnp.full((d_half,), math.pi / 2, dtype=jnp.float32)])           # (d_model,)

    packed = d_model < 128 and 128 % d_model == 0
    if packed:
        group = 128 // d_model
        width = 128
        k_dim = max(8, group)                  # contraction dim padded to >= 8 sublanes

        # Zero-pad so the packed lane-dense path is always taken and rows % 8 == 0.
        pad_to = 8 * group
        n_pad = ((n + pad_to - 1) // pad_to) * pad_to
        if n_pad != n:
            xf = jnp.pad(xf, (0, n_pad - n))
        rows = n_pad // group

        # x transposed: (k_dim, rows) with rows on the lane axis -> cheap HBM reads.
        x_t = xf.reshape(rows, group).T
        if k_dim > group:
            x_t = jnp.pad(x_t, ((0, k_dim - group), (0, 0)))

        # Constant expansion matrix: W[g, l] = omega_full[l % d_model] iff l // d_model == g.
        lane = jnp.arange(width, dtype=jnp.int32)
        w = jnp.where(
            (lane // d_model)[None, :] == jnp.arange(k_dim, dtype=jnp.int32)[:, None],
            jnp.tile(omega_full, group)[None, :],
            0.0,
        ).astype(jnp.float32)                                            # (k_dim, 128)
        shift_row = jnp.tile(shift_full, group)[None, :]                 # (1, 128)

        out_row_bytes = width * jnp.dtype(out_dtype).itemsize
        block_rows = _pick_block_rows_packed(rows, out_row_bytes)
        out2d = _launch_packed(x_t, w, shift_row, out_dtype, block_rows)  # (rows, 128)

        # Layout-changing reshape back to the module's (..., d_model) contract.
        out = out2d.reshape(n_pad, d_model)[:n]
        return out.reshape(*orig_shape, d_model)

    # Dense fallback: d_model >= 128, or d_model does not divide 128 (narrow
    # masked stores in the latter case -- correct but slower; not the hot path).
    rows = n
    x2d = xf.reshape(rows, 1)
    omega_row = omega_full[None, :]
    shift_row = shift_full[None, :]
    block_rows = _pick_block_rows_dense(rows, d_model)
    out = _launch_dense(x2d, omega_row, shift_row, out_dtype, block_rows)
    return out.reshape(*orig_shape, d_model)


# ----------------------------------------------------------------------------- demo / check

if __name__ == "__main__":
    def reference(x, omega):
        phase = x.astype(jnp.float32)[..., None] * omega
        return jnp.concatenate([jnp.sin(phase), jnp.cos(phase)], axis=-1)

    key = jax.random.PRNGKey(0)
    k1, k3 = jax.random.split(key)

    d_model = 32
    omega = make_omega(d_model)

    # 1) main demo: (B, T) = (2, 8) -> packed lane-dense path, single block.
    x1 = jax.random.uniform(k1, (2, 8), dtype=jnp.float32) * 10.0
    pe1 = jax.block_until_ready(sinusoidal_embedding(x1, omega))
    assert pe1.shape == (2, 8, d_model), pe1.shape
    assert jnp.allclose(pe1, reference(x1, omega), atol=2e-5, rtol=1e-5), "packed mismatch"

    # 2) get_pe-style positions with n not a multiple of the pack factor -> zero-pad + trim.
    x2 = jnp.arange(5, dtype=jnp.float32)
    pe2 = jax.block_until_ready(sinusoidal_embedding(x2, omega))
    assert pe2.shape == (5, d_model), pe2.shape
    assert jnp.allclose(pe2, reference(x2, omega), atol=2e-5, rtol=1e-5), "pad/trim mismatch"

    # 3) larger input -> multi-block grid (>= 2 steps), in-kernel chunk loop, ragged tail.
    x3 = jax.random.uniform(k3, (2, 1280), dtype=jnp.float32) * 10.0
    pe3 = jax.block_until_ready(sinusoidal_embedding(x3, omega))
    assert pe3.shape == (2, 1280, d_model), pe3.shape
    assert jnp.allclose(pe3, reference(x3, omega), atol=2e-5, rtol=1e-5), "multi-block mismatch"

    # 4) d_model >= 128 -> dense fallback kernel.
    omega_big = make_omega(256)
    x4 = jnp.arange(12, dtype=jnp.float32)
    pe4 = jax.block_until_ready(sinusoidal_embedding(x4, omega_big))
    assert pe4.shape == (12, 256), pe4.shape
    assert jnp.allclose(pe4, reference(x4, omega_big), atol=2e-5, rtol=1e-5), "dense mismatch"

    print("KERNEL_OK")
</pallas_src>

<mosaic_0001>
module attributes {stable_mosaic.version = 11 : i64} {
  func.func @_sin_packed_kernel(%arg0: i32, %arg1: memref<8x8xf32, #tpu.memory_space<vmem>>, %arg2: memref<8x128xf32, #tpu.memory_space<vmem>>, %arg3: memref<1x128xf32, #tpu.memory_space<vmem>>, %arg4: memref<8x128xf32, #tpu.memory_space<vmem>>) attributes {dimension_semantics = [#tpu.dimension_semantics<parallel>], iteration_bounds = array<i64: 1>, scalar_prefetch = 0 : i64, scratch_operands = 0 : i64, tpu.core_type = #tpu.core_type<tc>, window_params = [{transform_indices = @transform_0, window_bounds = array<i64: 8, 8>}, {pipeline_mode = #tpu.pipeline_mode<synchronous>, transform_indices = @transform_1, window_bounds = array<i64: 8, 128>}, {pipeline_mode = #tpu.pipeline_mode<synchronous>, transform_indices = @transform_2, window_bounds = array<i64: 1, 128>}, {transform_indices = @transform_3, window_bounds = array<i64: 8, 128>}]} {
    %c0 = arith.constant 0 : index
    %c0_0 = arith.constant 0 : index
    %0 = vector.load %arg2[%c0, %c0_0] : memref<8x128xf32, #tpu.memory_space<vmem>>, vector<8x128xf32>
    %c0_1 = arith.constant 0 : index
    %c0_2 = arith.constant 0 : index
    %1 = vector.load %arg3[%c0_1, %c0_2] : memref<1x128xf32, #tpu.memory_space<vmem>>, vector<1x128xf32>
    %c0_3 = arith.constant 0 : index
    %c0_4 = arith.constant 0 : index
    %2 = vector.load %arg1[%c0_3, %c0_4] : memref<8x8xf32, #tpu.memory_space<vmem>>, vector<8x8xf32>
    %cst = arith.constant dense<0.000000e+00> : vector<8x128xf32>
    %3 = tpu.matmul %2, %0, %cst {dimension_numbers = #tpu.dot_dimension_numbers<[0], [0], [1], [1], [0, 1, 1, 1], [], []>, precision = #tpu.contract_precision<fp32>} : vector<8x8xf32>, vector<8x128xf32>, vector<8x128xf32> -> vector<8x128xf32>
    %4 = vector.broadcast %1 : vector<1x128xf32> to vector<8x128xf32>
    %5 = arith.addf %3, %4 : vector<8x128xf32>
    %6 = math.sin %5 : vector<8x128xf32>
    %c0_5 = arith.constant 0 : index
    %c0_6 = arith.constant 0 : index
    %7 = vector.load %arg4[%c0_5, %c0_6] : memref<8x128xf32, #tpu.memory_space<vmem>>, vector<8x128xf32>
    tpu.vector_store %arg4[%c0_5, %c0_6], %6 {strides = array<i32>} : memref<8x128xf32, #tpu.memory_space<vmem>>, vector<8x128xf32>,
    return
  }
  func.func @transform_0(%arg0: i32) -> (i32, i32) {
    %c0_i32 = arith.constant 0 : i32
    %c0_i32_0 = arith.constant 0 : i32
    return %c0_i32, %arg0 : i32, i32
  }
  func.func @transform_1(%arg0: i32) -> (i32, i32) {
    %c0_i32 = arith.constant 0 : i32
    %c0_i32_0 = arith.constant 0 : i32
    %c0_i32_1 = arith.constant 0 : i32
    return %c0_i32, %c0_i32_0 : i32, i32
  }
  func.func @transform_2(%arg0: i32) -> (i32, i32) {
    %c0_i32 = arith.constant 0 : i32
    %c0_i32_0 = arith.constant 0 : i32
    %c0_i32_1 = arith.constant 0 : i32
    return %c0_i32, %c0_i32_0 : i32, i32
  }
  func.func @transform_3(%arg0: i32) -> (i32, i32) {
    %c0_i32 = arith.constant 0 : i32
    %c0_i32_0 = arith.constant 0 : i32
    return %arg0, %c0_i32 : i32, i32
  }
}

</mosaic_0001>

<bundles_post_ra>
// kernel: tile.12
= control target key start
LH: loop header
LB: loop body
LE: loop exit
PB: predicated region body
PF: predicated region fallthrough
CT: control target
= control target key end

     0   :  { %s22_s0 = inlined_call_operand.vmem [shape: f32[32], index: 0, kind: input, shape index: {}]   ;;  %s23_s1 = inlined_call_operand.vmem [shape: f32[4,32], index: 1, kind: output, shape index: {}]  }
   0x1   :  { %v4_v0 = vld [vmem:[%s22_s0] ss:$0 sm:$0xff] }
   0x2   :  { %5 = vst [vmem:[%s23_s1] sm:$0xf] %v4_v0 }

// kernel: tile.17
= control target key start
LH: loop header
LB: loop body
LE: loop exit
PB: predicated region body
PF: predicated region fallthrough
CT: control target
= control target key end

     0   :  { %vm7_vm0 = vcmask 261120   ;;  %s37_s8 = smov 32   ;;  %s38_s9 = smov 64   ;;  %vm13_vm1 = vcmask 1048320   ;;  %vm19_vm2 = vcmask 785920   ;;  %vm25_vm3 = vcmask 523520   ;;  %s55_s0 = inlined_call_operand.vmem [shape: f32[4,32], index: 0, kind: input, shape index: {}]   ;;  %s56_s1 = inlined_call_operand.vmem [shape: f32[1,128], index: 1, kind: output, shape index: {}]  }
   0x1   :  { %v4_v0 = vld [vmem:[%s55_s0] sm:$0xf]  ;;  %s36_s0 = smov 96  }
   0x2   :  { %5 = vst [vmem:[#allocation1] sm:$0xf] %v4_v0 }
   0x9   :  { %v10_v1 = vld [vmem:[#allocation1 + $0x3] sm:$0x1]   ;;  %v22_v2 = vld [vmem:[#allocation1 + $0x1] sm:$0x1]   ;;  %v6_v3 = vld [vmem:[#allocation1] sm:$0x1]  }
   0xa   :  { %11 = vrot.lane.b32.xlu0 %v10_v1, %s36_s0  ;;  %23 = vrot.lane.b32.xlu1 %v22_v2, %s37_s8  ;;  %v16_v4 = vld [vmem:[#allocation1 + $0x2] sm:$0x1]   ;;  %8 = vst.msk [vmem:[#allocation0] sm:$0x1] %vm7_vm0, %v6_v3  }
   0xe   :  { %17 = vrot.lane.b32.xlu0 %v16_v4, %s38_s9 }
  0x7c   :  { %v12_v5 = vpop.permute.xlu0 %11   ;;  %v24_v6 = vpop.permute.xlu1 %23  }
  0x7d   :  { %14 = vst.msk [vmem:[#allocation0] sm:$0x1] %vm13_vm1, %v12_v5  }
  0x80   :  { %v18_v7 = vpop.permute.xlu0 %17  }
  0x81   :  { %20 = vst.msk [vmem:[#allocation0] sm:$0x1] %vm19_vm2, %v18_v7  }
  0x82   :  { %26 = vst.msk [vmem:[#allocation0] sm:$0x1] %vm25_vm3, %v24_v6  }
  0x89   :  { %v30_v8 = vld [vmem:[#allocation0] sm:$0x1] }
  0x8a   :  { %32 = vst [vmem:[%s56_s1] sm:$0x1] %v30_v8 }

// kernel: sinusoidal_embedding.1
= control target key start
LH: loop header
LB: loop body
LE: loop exit
PB: predicated region body
PF: predicated region fallthrough
CT: control target
= control target key end

     0   :  { %v687_v2 = vmov 0.0   ;;  %vm688_vm0 = vmmov 0   ;;  %vm55_vm1 = vcmask 64512   ;;  %v689_v32 = vmov 683565275   ;;  %s754_s0 = inlined_call_operand.vmem [shape: f32[8,8], index: 0, kind: input, shape index: {}]   ;;  %s755_s1 = inlined_call_operand.vmem [shape: f32[8,128], index: 1, kind: input, shape index: {}]   ;;  %s756_s2 = inlined_call_operand.vmem [shape: f32[1,128], index: 2, kind: input, shape index: {}]   ;;  %s757_s3 = inlined_call_operand.vmem [shape: f32[8,128], index: 3, kind: output, shape index: {}]  }
   0x1   :  { %v16_v0 = vld [vmem:[%s754_s0] sm:$0xff]  ;;  %646 = vmatprep.subr.mxu0 %v687_v2  ;;  %648 = vmatprep.mubr.msk.f32.mxu0 %vm688_vm0, %v687_v2  ;;  %v690_v34 = vmov 2475754826   ;;  %v691_v37 = vmov 2131351028  }
   0x2   :  { %23 = vxpose.xlu0.b32.start.end [1/1] (short) (narrow) %v16_v0, 8  ;;  %v14_v1 = vld [vmem:[%s755_s1] sm:$0xff]  ;;  %631 = vmatprep.subr.mxu1 %v687_v2  ;;  %v692_v40 = vmov 2102212464   ;;  %v693_v43 = vmov 920167782  }
   0x3   :  { %v60_v3 = vand.u32 4294901760, %v14_v1  ;;  %633 = vmatprep.mubr.msk.f32.mxu1 %vm688_vm0, %v687_v2  ;;  %v614_v17 = vld [vmem:[%s756_s2] ss:$0 sm:$0xff]  ;;  %v694_v46 = vmov 1326507024  }
   0x5   :  { %647 = vmatpush3.msra.mxu0 %v60_v3  ;;  %632 = vmatpush3.msra.mxu1 %v60_v3  ;;  %v137_v4 = vsub.f32 %v14_v1, %v60_v3 }
   0x6   :  { %636 = vmatprep.subr.mxu1 %v687_v2  ;;  %651 = vmatprep.subr.mxu0 %v687_v2 }
   0x7   :  { %v138_v7 = vand.u32 4294901760, %v137_v4 }
   0x9   :  { %v139_v10 = vsub.f32 %v137_v4, %v138_v7 }
   0xb   :  { %v140_v13 = vand.u32 4294901760, %v139_v10 }
  0x82   :  { %v39_v5 = vpop.trf.xlu0 }
  0x83   :  { %v57_v6 = vsel %vm55_vm1, %v39_v5, 0 }
  0x84   :  { %v125_v8 = vand.u32 4294901760, %v57_v6 }
  0x86   :  { %v126_v9 = vsub.f32 %v57_v6, %v125_v8 }
  0x88   :  { %v127_v11 = vand.u32 4294901760, %v126_v9 }
  0x8a   :  { %649 = vmatmul.mubr.f32.vlgmr.msra.gmra.mrb[0].mxu0 %v127_v11  ;;  %v128_v12 = vsub.f32 %v126_v9, %v127_v11 }
  0x8b   :  { %652 = vmatpush3.msra.mxu0 %v138_v7  ;;  %653 = vmatprep.mubr.msk.f32.mxu0 %vm688_vm0, %v687_v2 }
  0x8c   :  { %v129_v14 = vand.u32 4294901760, %v128_v12  ;;  %656 = vmatprep.subr.mxu0 %v687_v2 }
  0x8e   :  { %634 = vmatmul.mubr.f32.vlgmr.msra.gmra.mrb[0].mxu1 %v129_v14 }
  0x8f   :  { %637 = vmatpush3.msra.mxu1 %v140_v13  ;;  %638 = vmatprep.mubr.msk.f32.mxu1 %vm688_vm0, %v687_v2 }
  0x90   :  { %641 = vmatprep.subr.mxu1 %v687_v2 }
  0x92   :  { %654 = vmatmul.mubr.f32.vlgmr.msra.gmra.mrb[0].mxu0 %v125_v8 }
  0x93   :  { %657 = vmatpush3.msra.mxu0 %v60_v3  ;;  %658 = vmatprep.mubr.msk.f32.mxu0 %vm688_vm0, %v687_v2 }
  0x96   :  { %639 = vmatmul.mubr.f32.vlgmr.msra.gmra.mrb[0].mxu1 %v125_v8 }
  0x97   :  { %642 = vmatpush3.msra.mxu1 %v137_v4  ;;  %643 = vmatprep.mubr.msk.f32.mxu1 %vm688_vm0, %v687_v2 }
  0x9a   :  { %659 = vmatmul.mubr.f32.vlgmr.msra.gmra.mrb[0].mxu0 %v125_v8 }
  0x9e   :  { %644 = vmatmul.mubr.f32.vlgmr.msra.gmra.mrb[0].mxu1 %v126_v9 }
 0x16d   :  { %v501_v15 = vpop.f32.mrb[0].mxu0 }
 0x16e   :  { %v660_v16 = vpop.f32.mrb[1].mxu0 }
 0x171   :  { %v281_v18 = vpop.f32.mrb[0].mxu1 }
 0x172   :  { %v661_v19 = vadd.f32 %v614_v17, %v281_v18  ;;  %v645_v20 = vpop.f32.mrb[1].mxu1 }
 0x174   :  { %v730_v21 = vadd.f32 %v661_v19, %v501_v15 }
 0x176   :  { %v508_v22 = vand.u32 2139095040, %v730_v21  ;;  %v505_v26 = vand.u32 2147483647, %v730_v21  ;;  %vm507_vm9 = vcmp.lt.s32.totalorder %v730_v21, 0  ;;  %vm597_vm14 = vweird.f32 %v730_v21 }
 0x178   :  { %v509_v23 = vshrl.u32 %v508_v22, 23  ;;  %v512_v29 = vand.u32 8388607, %v505_v26  ;;  %vm506_vm10 = vcmp.le.f32.partialorder %v505_v26, 0.7853982 }
 0x17a   :  { %v615_v24 = vadd.s32 4294967169, %v509_v23  ;;  %v513_v48 = vor.u32 8388608, %v512_v29 }
 0x17c   :  { %v515_v25 = vadd.s32 1, %v615_v24  ;;  %v553_v62 = vshll.u32 %v513_v48, 8 }
 0x17e   :  { %vm516_vm2 = vcmp.gt.s32.totalorder %v515_v25, 0 }
 0x17f   :  { %v517_v27 = vsel %vm516_vm2, %v515_v25, 0 }
 0x180   :  { %v519_v28 = vand.u32 31, %v517_v27  ;;  %v518_v31 = vshrl.u32 %v517_v27, 5 }
 0x182   :  { %v520_v30 = vsub.s32 32, %v519_v28  ;;  %v522_v33 = vshll.u32 %v689_v32, %v519_v28  ;;  %v525_v35 = vshll.u32 %v690_v34, %v519_v28  ;;  %v528_v39 = vshll.u32 %v691_v37, %v519_v28 }
 0x183   :  { %v531_v42 = vshll.u32 %v692_v40, %v519_v28  ;;  %v534_v45 = vshll.u32 %v693_v43, %v519_v28  ;;  %vm537_vm3 = vcmp.lt.s32.totalorder %v518_v31, 1  ;;  %vm540_vm4 = vcmp.lt.s32.totalorder %v518_v31, 4 }
 0x184   :  { %v523_v36 = vshrl.u32 %v690_v34, %v520_v30  ;;  %v526_v38 = vshrl.u32 %v691_v37, %v520_v30  ;;  %v529_v41 = vshrl.u32 %v692_v40, %v520_v30  ;;  %v532_v44 = vshrl.u32 %v693_v43, %v520_v30 }
 0x185   :  { %v535_v47 = vshrl.u32 %v694_v46, %v520_v30  ;;  %v521_v57 = vshrl.u32 %v689_v32, %v520_v30  ;;  %vm539_vm5 = vcmp.lt.s32.totalorder %v518_v31, 3  ;;  %vm538_vm6 = vcmp.lt.s32.totalorder %v518_v31, 2 }
 0x186   :  { %v524_v49 = vor.u32 %v523_v36, %v522_v33  ;;  %v527_v50 = vor.u32 %v526_v38, %v525_v35  ;;  %v530_v51 = vor.u32 %v529_v41, %v528_v39  ;;  %v533_v52 = vor.u32 %v532_v44, %v531_v42 }
 0x187   :  { %v536_v53 = vor.u32 %v535_v47, %v534_v45 }
 0x188   :  { %v542_v54 = vsel %vm540_vm4, %v530_v51, 2102212464  ;;  %v545_v55 = vsel %vm537_vm3, %v524_v49, %v527_v50  ;;  %v549_v56 = vsel %vm537_vm3, %v527_v50, %v530_v51  ;;  %v546_v58 = vsel %vm540_vm4, %v533_v52, 920167782 }
 0x189   :  { %v550_v59 = vsel %vm540_vm4, %v536_v53, 1326507024  ;;  %v547_v60 = vsel %vm539_vm5, %v530_v51, %v546_v58  ;;  %v541_v63 = vsel %vm537_vm3, %v521_v57, %v524_v49  ;;  %v543_v0 = vsel %vm539_vm5, %v527_v50, %v542_v54 }
 0x18a   :  { %v551_v61 = vsel %vm539_vm5, %v533_v52, %v550_v59  ;;  %v548_v1 = vsel %vm538_vm6, %v545_v55, %v547_v60  ;;  %v544_v7 = vsel %vm538_vm6, %v541_v63, %v543_v0 }
 0x18b   :  { %v552_v2 = vsel %vm538_vm6, %v549_v56, %v551_v61  ;;  %v739_v5 = vmul.u32.u64.low %v553_v62, %v548_v1  ;;  %v740_v6 = vmul.u32.u64.high %v553_v62, %v548_v1, %v739_v5  ;;  %v560_v9 = vmul.u32 %v553_v62, %v544_v7 }
 0x18c   :  { %v736_v3 = vmul.u32.u64.low %v553_v62, %v552_v2  ;;  %v737_v4 = vmul.u32.u64.high %v553_v62, %v552_v2, %v736_v3 }
 0x18d   :  { %v563_v8 = vadd.s32 1, %v740_v6 }
 0x18e   :  { %vm562_vm7 = vc.u32 %v737_v4, %v739_v5  ;;  %v561_v22 = vadd.s32 %v739_v5, %v737_v4 }
 0x18f   :  { %v564_v10 = vsel %vm562_vm7, %v563_v8, %v740_v6 }
 0x190   :  { %v565_v11 = vadd.s32 %v564_v10, %v560_v9 }
 0x192   :  { %v566_v12 = vadd.s32 536870912, %v565_v11 }
 0x194   :  { %v567_v13 = vshrl.u32 %v566_v12, 30 }
 0x196   :  { %v568_v14 = vshll.u32 %v567_v13, 30  ;;  %v591_v35 = vsub.s32 4, %v567_v13 }
 0x198   :  { %v569_v15 = vsub.s32 %v565_v11, %v568_v14  ;;  %v592_v38 = vsel %vm507_vm9, %v591_v35, %v567_v13 }
 0x199   :  { %v594_v40 = vsel %vm506_vm10, 0, %v592_v38 }
 0x19a   :  { %v571_v16 = vsub.s32 0, %v569_v15  ;;  %v598_v41 = vadd.s32 3, %v594_v40 }
 0x19c   :  { %v616_v17 = vmin.u32 %v571_v16, %v569_v15  ;;  %v599_v42 = vand.u32 3, %v598_v41 }
 0x19e   :  { %v573_v18 = vclz %v616_v17  ;;  %vm604_vm11 = vcmp.eq.s32.totalorder %v599_v42, 2  ;;  %vm601_vm12 = vcmp.eq.s32.totalorder %v599_v42, 0  ;;  %vm600_vm13 = vcmp.lt.s32.totalorder %v599_v42, 2 }
 0x1a0   :  { %v617_v19 = vadd.s32 4294967294, %v573_v18 }
 0x1a2   :  { %vm618_vm8 = vcmp.lt.s32.totalorder %v617_v19, 0 }
 0x1a3   :  { %v576_v20 = vsel %vm618_vm8, 0, %v617_v19 }
 0x1a4   :  { %v577_v23 = vsub.s32 32, %v576_v20  ;;  %v581_v24 = vsub.s32 4294967266, %v576_v20  ;;  %v578_v25 = vshll.u32 %v569_v15, %v576_v20 }
 0x1a6   :  { %v579_v27 = vshrl.u32 %v561_v22, %v577_v23  ;;  %v582_v28 = vadd.s32 127, %v581_v24 }
 0x1a8   :  { %v580_v29 = vor.u32 %v579_v27, %v578_v25  ;;  %v583_v30 = vshll.u32 %v582_v28, 23 }
 0x1aa   :  { %v584_v31 = vor.u32 4788187, %v583_v30  ;;  %v587_v33 = vcvt.s32.f32 %v580_v29 }
 0x1ac   :  { %v585_v32 = vand.u32 2147483647, %v584_v31 }
 0x1ae   :  { %v588_v34 = vmul.f32 %v587_v33, %v585_v32 }
 0x1b0   :  { %v589_v36 = vxor.u32 2147483648, %v588_v34 }
 0x1b2   :  { %v590_v37 = vsel %vm507_vm9, %v589_v36, %v588_v34 }
 0x1b3   :  { %v593_v39 = vsel %vm506_vm10, %v730_v21, %v590_v37 }
 0x1b4   :  { %683 = vcosq.f32 %v593_v39 }
 0x1b5   :  { %685 = vsinq.f32 %v593_v39 }
 0x1be   :  { %v684_v43 = vpop.eup %683 }
 0x1bf   :  { %v686_v44 = vpop.eup %685  ;;  %v605_v45 = vxor.u32 2147483648, %v684_v43 }
 0x1c0   :  { %v602_v46 = vxor.u32 2147483648, %v686_v44 }
 0x1c1   :  { %v606_v47 = vsel %vm604_vm11, %v605_v45, %v686_v44 }
 0x1c2   :  { %v603_v48 = vsel %vm601_vm12, %v684_v43, %v602_v46 }
 0x1c3   :  { %v607_v26 = vsel %vm600_vm13, %v603_v48, %v606_v47 }
 0x1c4   :  { %v608_v49 = vsel %vm597_vm14, nan, %v607_v26 }
 0x1c5   :  { %609 = vst [vmem:[%s757_s3] sm:$0xff] %v608_v49 }

</bundles_post_ra>
